<compile_context>
chip_gen: v7x
topology: tpu7x:2x2x1
jax: 0.10.0
libtpu: 0.0.40
codegen_flags: <defaults>
</compile_context>

<pallas_src>
import jax
import jax.numpy as jnp
from jax.experimental import pallas as pl
from jax.experimental.pallas import tpu as pltpu


def mlp_kernel(x_ref, w1_ref, b1_ref, w2_ref, b2_ref, o_ref):
    # Linear 1 on the MXU (bf16 x bf16 -> f32 accumulate).
    h = jnp.dot(x_ref[...], w1_ref[...], preferred_element_type=jnp.float32)
    # Bias + ReLU in f32 on the VPU.
    h = jnp.maximum(h + b1_ref[...], 0.0)
    # Linear 2: cast activations back to the weight dtype (bf16) so the MXU
    # stays on the fast path; accumulate in f32.
    # TODO(synk): for large I, split this dot over I-chunks with
    # lax.fori_loop(unroll=True) accumulating into VMEM scratch.
    y = jnp.dot(h.astype(w2_ref.dtype), w2_ref[...],
                preferred_element_type=jnp.float32)
    o_ref[...] = (y + b2_ref[...]).astype(o_ref.dtype)


def _resident_spec(block_shape):
    """Constant-index_map (resident) operand; single-buffered when supported."""
    index_map = lambda i: (0,) * len(block_shape)
    try:
        return pl.BlockSpec(block_shape, index_map,
                            pipeline_mode=pl.Buffered(1))
    except Exception:  # older jax without pipeline_mode / Buffered
        return pl.BlockSpec(block_shape, index_map)


def _vmem_limit_bytes():
    """Raise the scoped-VMEM cap above the 16/32 MiB default, with headroom."""
    cap = 64 << 20
    try:
        cap = int(getattr(pltpu.get_tpu_info(), "vmem_capacity_bytes", cap))
    except Exception:
        pass
    return int(min(cap * 3 // 4, 100 << 20))


def _choose_tm(m, i_dim, tm_req):
    """Row tile selection:
      * multiple of 8 sublanes, as large as requested (default 1024),
      * bounded so the (tm, I) f32 intermediate stays <= ~4 MiB,
      * >= 2 grid steps when possible so megacore (v7x, 2 TCs) can split the
        parallel row axis."""
    tm = max(8, (int(tm_req) // 8) * 8)
    interm_cap_rows = max(8, (((4 << 20) // (4 * i_dim)) // 8) * 8)
    tm = min(tm, interm_cap_rows)
    m8 = ((m + 7) // 8) * 8
    tm = min(tm, m8)
    if m8 >= 16 and pl.cdiv(m8, tm) < 2:
        tm = max(8, ((m8 // 2 + 7) // 8) * 8)
        while tm > 8 and pl.cdiv(m8, tm) < 2:
            tm -= 8
    return tm


def mlp_forward(x, w1, b1, w2, b2, *, tm=1024):
    """x: (..., H); w1: (H, I); b1: (I,); w2: (I, H); b2: (H,)."""
    *lead, H = x.shape
    I = w1.shape[1]
    out_dtype = x.dtype

    # Flatten leading dims -> lane-dense 2-D (rows, H). No full-array pad copy.
    x2 = x.reshape(-1, H)
    M = x2.shape[0]
    tm = _choose_tm(M, I, tm)
    grid = (pl.cdiv(M, tm),)  # partial last tile handled by masked load/store

    # bf16 matmul operands; biases stay f32 for the VPU epilogue.
    mm_dtype = jnp.bfloat16 if x2.dtype == jnp.float32 else x2.dtype
    x2b = x2.astype(mm_dtype)
    w1b = w1.astype(mm_dtype)
    w2b = w2.astype(mm_dtype)
    b1f = b1.astype(jnp.float32).reshape(1, I)
    b2f = b2.astype(jnp.float32).reshape(1, H)

    cost = pl.CostEstimate(
        flops=4 * M * H * I,  # two matmuls: 2*M*H*I FLOPs each
        transcendentals=0,
        bytes_accessed=(x2b.size * x2b.dtype.itemsize
                        + w1b.size * w1b.dtype.itemsize
                        + w2b.size * w2b.dtype.itemsize
                        + b1f.size * 4 + b2f.size * 4
                        + M * H * jnp.dtype(out_dtype).itemsize),
    )

    out = pl.pallas_call(
        mlp_kernel,
        out_shape=jax.ShapeDtypeStruct((M, H), out_dtype),
        grid_spec=pltpu.PrefetchScalarGridSpec(
            num_scalar_prefetch=0,
            grid=grid,
            in_specs=[
                pl.BlockSpec((tm, H), lambda i: (i, 0)),  # x row tile (streamed)
                _resident_spec((H, I)),                   # W1 (resident, 1-buf)
                _resident_spec((1, I)),                   # b1
                _resident_spec((I, H)),                   # W2
                _resident_spec((1, H)),                   # b2
            ],
            out_specs=pl.BlockSpec((tm, H), lambda i: (i, 0)),
        ),
        compiler_params=pltpu.CompilerParams(
            dimension_semantics=("parallel",),
            vmem_limit_bytes=_vmem_limit_bytes()),
        cost_estimate=cost,
    )(x2b, w1b, b1f, w2b, b2f)

    return out.reshape(*lead, H)


if __name__ == "__main__":
    # config: hidden_size=32, intermediate_size=128, bias=True
    B, S, H, I = 2, 8, 32, 128

    key = jax.random.PRNGKey(0)
    kx, k1, kb1, k2, kb2 = jax.random.split(key, 5)
    x = jax.random.normal(kx, (B, S, H), dtype=jnp.float32)
    w1 = jax.random.normal(k1, (H, I), dtype=jnp.float32) * 0.1
    b1 = jax.random.normal(kb1, (I,), dtype=jnp.float32) * 0.1
    w2 = jax.random.normal(k2, (I, H), dtype=jnp.float32) * 0.1
    b2 = jax.random.normal(kb2, (H,), dtype=jnp.float32) * 0.1

    out = mlp_forward(x, w1, b1, w2, b2)
    out = jax.block_until_ready(out)

    assert out.shape == (B, S, H)
    assert out.dtype == jnp.float32

    # Matched-precision reference (same bf16 matmul operands, f32 accumulate).
    x2b = x.reshape(-1, H).astype(jnp.bfloat16)
    h_ref = jnp.maximum(
        jnp.dot(x2b, w1.astype(jnp.bfloat16),
                preferred_element_type=jnp.float32) + b1, 0.0)
    ref_bf16 = (jnp.dot(h_ref.astype(jnp.bfloat16), w2.astype(jnp.bfloat16),
                        preferred_element_type=jnp.float32) + b2).reshape(B, S, H)
    assert jnp.allclose(out, ref_bf16, atol=1e-3, rtol=1e-3), \
        "mismatch vs matched-precision reference"

    # Loose sanity check vs the pure-f32 reference (bf16 quantization noise).
    ref_f32 = (jnp.maximum(x.reshape(-1, H) @ w1 + b1, 0.0) @ w2 + b2
               ).reshape(B, S, H)
    assert jnp.allclose(out, ref_f32, atol=5e-2, rtol=5e-2), \
        "mismatch vs f32 reference"

    print("KERNEL_OK")
</pallas_src>

<mosaic_0001>
module attributes {stable_mosaic.version = 11 : i64} {
  func.func @mlp_kernel(%arg0: i32, %arg1: memref<8x32xbf16, #tpu.memory_space<vmem>>, %arg2: memref<32x128xbf16, #tpu.memory_space<vmem>>, %arg3: memref<1x128xf32, #tpu.memory_space<vmem>>, %arg4: memref<128x32xbf16, #tpu.memory_space<vmem>>, %arg5: memref<1x32xf32, #tpu.memory_space<vmem>>, %arg6: memref<8x32xf32, #tpu.memory_space<vmem>>) attributes {dimension_semantics = [#tpu.dimension_semantics<parallel>], iteration_bounds = array<i64: 2>, scalar_prefetch = 0 : i64, scratch_operands = 0 : i64, tpu.core_type = #tpu.core_type<tc>, window_params = [{transform_indices = @transform_0, window_bounds = array<i64: 8, 32>}, {pipeline_mode = #tpu.pipeline_mode<synchronous>, transform_indices = @transform_1, window_bounds = array<i64: 32, 128>}, {pipeline_mode = #tpu.pipeline_mode<synchronous>, transform_indices = @transform_2, window_bounds = array<i64: 1, 128>}, {pipeline_mode = #tpu.pipeline_mode<synchronous>, transform_indices = @transform_3, window_bounds = array<i64: 128, 32>}, {pipeline_mode = #tpu.pipeline_mode<synchronous>, transform_indices = @transform_4, window_bounds = array<i64: 1, 32>}, {transform_indices = @transform_5, window_bounds = array<i64: 8, 32>}]} {
    %c0 = arith.constant 0 : index
    %c0_0 = arith.constant 0 : index
    %0 = vector.load %arg1[%c0, %c0_0] : memref<8x32xbf16, #tpu.memory_space<vmem>>, vector<8x32xbf16>
    %c0_1 = arith.constant 0 : index
    %c0_2 = arith.constant 0 : index
    %1 = vector.load %arg2[%c0_1, %c0_2] : memref<32x128xbf16, #tpu.memory_space<vmem>>, vector<32x128xbf16>
    %cst = arith.constant dense<0.000000e+00> : vector<8x128xf32>
    %2 = tpu.matmul %0, %1, %cst {dimension_numbers = #tpu.dot_dimension_numbers<[1], [0], [0], [1], [0, 0, 1, 1], [], []>} : vector<8x32xbf16>, vector<32x128xbf16>, vector<8x128xf32> -> vector<8x128xf32>
    %c0_3 = arith.constant 0 : index
    %c0_4 = arith.constant 0 : index
    %3 = vector.load %arg3[%c0_3, %c0_4] : memref<1x128xf32, #tpu.memory_space<vmem>>, vector<1x128xf32>
    %4 = vector.broadcast %3 : vector<1x128xf32> to vector<8x128xf32>
    %5 = arith.addf %2, %4 : vector<8x128xf32>
    %cst_5 = arith.constant 0.000000e+00 : f32
    %6 = vector.broadcast %cst_5 : f32 to vector<8x128xf32>
    %7 = arith.maximumf %5, %6 : vector<8x128xf32>
    %8 = arith.truncf %7 : vector<8x128xf32> to vector<8x128xbf16>
    %c0_6 = arith.constant 0 : index
    %c0_7 = arith.constant 0 : index
    %9 = vector.load %arg4[%c0_6, %c0_7] : memref<128x32xbf16, #tpu.memory_space<vmem>>, vector<128x32xbf16>
    %cst_8 = arith.constant dense<0.000000e+00> : vector<8x32xf32>
    %10 = tpu.matmul %8, %9, %cst_8 {dimension_numbers = #tpu.dot_dimension_numbers<[1], [0], [0], [1], [0, 0, 1, 1], [], []>} : vector<8x128xbf16>, vector<128x32xbf16>, vector<8x32xf32> -> vector<8x32xf32>
    %c0_9 = arith.constant 0 : index
    %c0_10 = arith.constant 0 : index
    %11 = vector.load %arg5[%c0_9, %c0_10] : memref<1x32xf32, #tpu.memory_space<vmem>>, vector<1x32xf32>
    %12 = vector.broadcast %11 : vector<1x32xf32> to vector<8x32xf32>
    %13 = arith.addf %10, %12 : vector<8x32xf32>
    %c0_11 = arith.constant 0 : index
    %c0_12 = arith.constant 0 : index
    %14 = vector.load %arg6[%c0_11, %c0_12] : memref<8x32xf32, #tpu.memory_space<vmem>>, vector<8x32xf32>
    tpu.vector_store %arg6[%c0_11, %c0_12], %13 {strides = array<i32>} : memref<8x32xf32, #tpu.memory_space<vmem>>, vector<8x32xf32>,
    return
  }
  func.func @transform_0(%arg0: i32) -> (i32, i32) {
    %c0_i32 = arith.constant 0 : i32
    %c0_i32_0 = arith.constant 0 : i32
    return %arg0, %c0_i32 : i32, i32
  }
  func.func @transform_1(%arg0: i32) -> (i32, i32) {
    %c0_i32 = arith.constant 0 : i32
    %c0_i32_0 = arith.constant 0 : i32
    %c0_i32_1 = arith.constant 0 : i32
    return %c0_i32, %c0_i32_0 : i32, i32
  }
  func.func @transform_2(%arg0: i32) -> (i32, i32) {
    %c0_i32 = arith.constant 0 : i32
    %c0_i32_0 = arith.constant 0 : i32
    %c0_i32_1 = arith.constant 0 : i32
    return %c0_i32, %c0_i32_0 : i32, i32
  }
  func.func @transform_3(%arg0: i32) -> (i32, i32) {
    %c0_i32 = arith.constant 0 : i32
    %c0_i32_0 = arith.constant 0 : i32
    %c0_i32_1 = arith.constant 0 : i32
    return %c0_i32, %c0_i32_0 : i32, i32
  }
  func.func @transform_4(%arg0: i32) -> (i32, i32) {
    %c0_i32 = arith.constant 0 : i32
    %c0_i32_0 = arith.constant 0 : i32
    %c0_i32_1 = arith.constant 0 : i32
    return %c0_i32, %c0_i32_0 : i32, i32
  }
  func.func @transform_5(%arg0: i32) -> (i32, i32) {
    %c0_i32 = arith.constant 0 : i32
    %c0_i32_0 = arith.constant 0 : i32
    return %arg0, %c0_i32 : i32, i32
  }
}

</mosaic_0001>

<bundles_post_ra>
// kernel: tpu_custom_call.1
= control target key start
LH: loop header
LB: loop body
LE: loop exit
PB: predicated region body
PF: predicated region fallthrough
CT: control target
= control target key end

     0   :  { %10 = vsyncpa [#allocation3], 0  ;;  %s825_s0 = inlined_call_operand.vmem [shape: bf16[16,32], index: 0, kind: input, shape index: {}]   ;;  %s826_s1 = inlined_call_operand.vmem [shape: bf16[32,128], index: 1, kind: input, shape index: {}]   ;;  %s827_s2 = inlined_call_operand.vmem [shape: f32[1,128], index: 2, kind: input, shape index: {}]   ;;  %s828_s3 = inlined_call_operand.vmem [shape: bf16[128,32], index: 3, kind: input, shape index: {}]   ;;  %s829_s4 = inlined_call_operand.vmem [shape: f32[1,32], index: 4, kind: input, shape index: {}]   ;;  %s830_s5 = inlined_call_operand.hbm [shape: f32[16,32], index: 5, kind: output, shape index: {}]  }
   0x1   :  { %12 = vsyncpa [#allocation3 + $0x1], 0  ;;  %s687_s18 = smov 0   ;;  %s689_s19 = smov 0  }
   0x2   :  { %s691_s20 = smov 0   ;;  %s693_s21 = smov 0  }
   0x3 LB: > { %s708_s22 = sadd.s32 4294967295, %s652_s21   ;;  %s476_s23 = sadd.s32 4294967294, %s652_s21   ;;  %s652_s21 = sphi %s693_s21, %s836_s21   ;;  %s648_s20 = sphi %s691_s20, %s835_s20   ;;  %s644_s19 = sphi %s689_s19, %s834_s19   ;;  %s640_s18 = sphi %s687_s18, %s833_s18  }
   0x4   : > { %s712_s24 = sadd.s32 1, %s652_s21   ;;  %s135_s25 = sadd.s32 1, %s648_s20 }
   0x5   : > { %s132_s26 = ssub.s32 %s652_s21, %s712_s24  ;;  %p145_p0 = scmp.ne.s32.totalorder %s648_s20, %s644_s19 }
   0x6   : > { %p133_p1 = scmp.eq.s32.totalorder %s132_s26, 0  ;;  %p146_p2 = scmp.eq.s32.totalorder %s708_s22, 1 }
   0x7   : > { %p151_p3 = scmp.ne.s32.totalorder %s644_s19, %s640_s18  ;;  %p152_p4 = scmp.eq.s32.totalorder %s476_s23, 1 }
   0x8   : > { %s723_s27 = scalar_select %p133_p1, %s648_s20, %s135_s25  }
   0x9   : > { %p725_p5 = por %p146_p2, %p145_p0  ;;  %p729_p6 = por %p152_p4, %p151_p3 }
   0xa   : > { %p479_p7 = scmp.ge.s32.totalorder %s652_s21, 1  ;;  %p189_p8 = scmp.lt.s32.totalorder %s652_s21, 3 }
   0xc   : > { %p190_p9 = pnand %p479_p7, %p189_p8 }
   0xd   : > { %v580_v0 = vld [vmem:[%s826_s1] sm:$0xff] (!%p190_p9)   ;;  %v654_v1 = vmov (!%p190_p9), 0.0   ;;  %v581_v2 = vld [vmem:[%s826_s1 + $0x8] sm:$0xff] (!%p190_p9)   ;;  %vm655_vm0 = vmmov (!%p190_p9), 0   ;;  %p216_p10 = scmp.lt.s32.totalorder (!%p190_p9), %s708_s22, 1  ;;  %vm245_vm1 = vcmask (!%p190_p9), 261120  }
   0xe   : > { %193 = sbr.rel (%p190_p9) target bundleno = 472 (0x1d8), region = 40  ;;  %511 = vmatprep.subr.bf16.mxu0 (!%p190_p9), %v654_v1  ;;  %519 = vmatprep.subr.bf16.mxu1 (!%p190_p9), %v654_v1  ;;  %v582_v3 = vld [vmem:[%s828_s3] sm:$0xff] (!%p190_p9)   ;;  %v583_v4 = vld [vmem:[%s828_s3 + $0x8] sm:$0xff] (!%p190_p9)   ;;  %v584_v6 = vld [vmem:[%s828_s3 + $0x10] sm:$0xff] (!%p190_p9)   ;;  %s213_s16 = sand.u32 (!%p190_p9), 1, %s644_s19  }
   0xf   : > { %512 = vmatpush3.bf16.msra.mxu0 (!%p190_p9), %v580_v0  ;;  %515 = vmatprep.mubr.msk.bf16.mxu0 (!%p190_p9), %vm655_vm0, %v654_v1  ;;  %v585_v7 = vld [vmem:[%s828_s3 + $0x18] sm:$0xff] (!%p190_p9)   ;;  %v586_v8 = vld [vmem:[%s828_s3 + $0x20] sm:$0xff] (!%p190_p9)   ;;  %v587_v9 = vld [vmem:[%s828_s3 + $0x28] sm:$0xff] (!%p190_p9)   ;;  %s496_s26 = sshll.u32 (!%p190_p9), %s708_s22, 7 }
  0x10   : > { %513 = vmatprep.subr.bf16.mxu0 (!%p190_p9), %v654_v1  ;;  %535 = vmatprep.mubr.msk.bf16.mxu1 (!%p190_p9), %vm655_vm0, %v654_v1  ;;  %v588_v10 = vld [vmem:[%s828_s3 + $0x30] sm:$0xff] (!%p190_p9)   ;;  %v589_v11 = vld [vmem:[%s828_s3 + $0x38] sm:$0xff] (!%p190_p9)   ;;  %v482_v12 = vld [vmem:[%s827_s2] ss:$0 sm:$0xff] (!%p190_p9)  ;;  %s782_s9 = scalar_lea.hbm (!%p190_p9), %s830_s5, %s496_s26 }
  0x11   : > { %520 = vmatpush3.bf16.msra.mxu1 (!%p190_p9), %v582_v3  ;;  %v486_v20 = vld [vmem:[%s829_s4] ss:$0 sm:$0xff] (!%p190_p9) }
  0x12   : > { %521 = vmatprep.subr.bf16.mxu1 (!%p190_p9), %v654_v1 }
  0x13   : > { %514 = vmatpush3.bf16.msra.mxu0 (!%p190_p9), %v581_v2 }
  0x15   : > { %s217_s11 = scalar_select %p216_p10, %s708_s22, 1  ;;  %522 = vmatpush3.bf16.msra.mxu1 %v583_v4 }
  0x16   : > { %523 = vmatprep.subr.bf16.mxu1 %v654_v1  ;;  %s404_s22 = scalar_lea.sflag [#allocation3], %s213_s16 }
  0x17   : > { %s481_s14 = sshll.u32 %s217_s11, 2  ;;  %s656_s11 = smov [#allocation2]  }
  0x18   : > { %s219_s17 = scalar_lea.vmem %s825_s0, %s481_s14  ;;  %s594_s12 = sshll.u32 %s656_s11, 4  ;;  %s595_s12 = int_to_ptr.vmem [resolvable:$false] %s594_s12 }
  0x19   : > { %v221_v5 = vld [vmem:[%s219_s17] sm:$0xf]  ;;  %524 = vmatpush3.bf16.msra.mxu1 %v584_v6  ;;  %s480_s17 = sshll.u32 %s213_s16, 3  ;;  %s596_s13 = scalar_lea.vmem %s595_s12, 256 }
  0x1a   : > { %516 = vmatmul.mubr.msk.bf16.vlgmr.msra.gmra.mrb[0].mxu0 %vm245_vm1, %v221_v5  ;;  %525 = vmatprep.subr.bf16.mxu1 %v654_v1  ;;  %s215_s30 = scalar_lea.vmem [#allocation2], %s480_s17 }
  0x1b   : > { %s417_s6 = sshll.u32 %s215_s30, 4  ;;  %s784_s6 = int_to_ptr.vmem [resolvable:$true] %s417_s6 }
  0x1c   : > { %s590_s10 = scalar_lea.vmem %s784_s6, 128  ;;  %p597_p0 = scmp.lt.s32.totalorder %s784_s6, %s595_s12 }
  0x1d   : > { %526 = vmatpush3.bf16.msra.mxu1 %v585_v7  ;;  %p591_p11 = scmp.ne.s32.totalorder %s784_s6, %s590_s10  ;;  %p598_p1 = scmp.lt.s32.totalorder %s596_s13, %s590_s10 }
  0x1e   : > { %527 = vmatprep.subr.bf16.mxu1 %v654_v1 }
  0x1f   : > { %p592_p12 = pnand %p591_p11, %p725_p5  ;;  %p599_p2 = por %p598_p1, %p597_p0 }
  0x21   : > { %528 = vmatpush3.bf16.msra.mxu1 %v586_v8  ;;  %p593_p13 = pneg %p592_p12 }
  0x22   : > { %529 = vmatprep.subr.bf16.mxu1 %v654_v1 }
  0x23   : > { %p600_p3 = pnand %p599_p2, %p593_p13 }
  0x25   : > { %530 = vmatpush3.bf16.msra.mxu1 %v587_v9 }
  0x26   : > { %531 = vmatprep.subr.bf16.mxu1 %v654_v1 }
  0x29   : > { %532 = vmatpush3.bf16.msra.mxu1 %v588_v10 }
  0x2a   : > { %533 = vmatprep.subr.bf16.mxu1 %v654_v1 }
  0x2d   : > { %534 = vmatpush3.bf16.msra.mxu1 %v589_v11 }
  0xed   : > { %v283_v13 = vpop.f32.mrb[0].mxu0 }
  0xee   : > { %v284_v14 = vadd.f32 %v482_v12, %v283_v13  ;;  %v517_v15 = vpop.f32.mrb[1].mxu0 }
  0xef   : > { %v286_v16 = vpop.f32.mrb[2].mxu0 }
  0xf0   : > { %v289_v17 = vmax.f32 %v284_v14, 0.0  ;;  %v518_v18 = vpop.f32.mrb[3].mxu0 }
  0xf2   : > { %v290_v19 = vpack.c.bf16 %v289_v17, %v289_v17 }
  0xf4   : > { %536 = vmatmul.mubr.bf16.vlgmr.msra.gmra.mrb[0].mxu1 %v290_v19 }
 0x1c7   : > { %v396_v21 = vpop.f32.mrb[0].mxu1 }
 0x1c8   : > { %v397_v22 = vadd.f32 %v486_v20, %v396_v21  ;;  %v537_v23 = vpop.f32.mrb[1].mxu1 }
 0x1c9   : > { %v399_v24 = vpop.f32.mrb[2].mxu1 }
 0x1ca   : > { %v538_v25 = vpop.f32.mrb[3].mxu1  ;;  %402 = vst.msk [vmem:[%s215_s30] sm:$0xff] %vm245_vm1, %v397_v22 }
 0x1cb   : > { %603 = shalt.err (!%p600_p3)
}
 0x1cc   : > { %s604_s14 = scalar_lea.hbm %s782_s9, 128  ;;  %s608_s17 = scalar_lea.hbm %s830_s5, 256 }
 0x1cd   : > { %p605_p4 = scmp.ne.s32.totalorder %s782_s9, %s604_s14  ;;  %p609_p9 = scmp.lt.u32.totalorder %s782_s9, %s830_s5 }
 0x1ce   : > { %p610_p10 = scmp.lt.u32.totalorder %s608_s17, %s604_s14  ;;  %p612_p12 = scmp.lt.u32.totalorder %s604_s14, %s782_s9 }
 0x1cf   : > { %p606_p7 = pnand %p605_p4, %p725_p5 }
 0x1d0   : > { %p611_p11 = por %p610_p10, %p609_p9 }
 0x1d1   : > { %p607_p8 = pneg %p606_p7 }
 0x1d2   : > { %p613_p13 = por %p612_p12, %p611_p11 }
 0x1d4   : > { %p614_p0 = pnand %p613_p13, %p607_p8 }
 0x1d6   : > { %617 = shalt.err (!%p614_p0)
}
 0x1d7   : > { %539 = dma.vmem_to_hbm [thread:$0]  (%p725_p5), %s784_s6, 128, %s782_s9, %s404_s22  }
 0x1d8 PF: > { %p545_p1 = scmp.ge.s32.totalorder %s652_s21, 2  ;;  %s429_s26 = sand.u32 1, %s640_s18  }
 0x1d9   : > { %s430_s30 = scalar_lea.sflag [#allocation3], %s429_s26 }
 0x1da   : > { %p542_p2 = pnand %p545_p1, %p729_p6 }
 0x1dc   : > { %635 = dma.done.wait (!%p542_p2), %s430_s30, 128  }
 0x1dd   : > { %637 = vsyncadd (!%p542_p2), %s430_s30, 4294967168  ;;  %p15_p3 = scmp.ge.s32.totalorder %s712_s24, 4   ;;  %s833_s18 = smov %s644_s19 }
 0x1de   : > { %s834_s19 = smov %s648_s20  ;;  %s835_s20 = smov %s723_s27 }
 0x1df   : > { %s836_s21 = smov %s712_s24  ;;  %17 = sbr.rel (!%p15_p3) target bundleno = 3 (0x3), region = 75 }
 0x1e6   :  { %435 = vsyncpa [#allocation3], 1 }
 0x1e7   :  { %437 = vsyncpa [#allocation3 + $0x1], 1 }

</bundles_post_ra>
